<compile_context>
chip_gen: v5e
topology: v5e:2x2
jax: 0.10.0
libtpu: 0.0.40
codegen_flags: <defaults>
</compile_context>

<pallas_src>
import functools

import jax
import jax.numpy as jnp
import numpy as np
from jax.experimental import pallas as pl
from jax.experimental.pallas import tpu as pltpu


# --------------------------------------------------------------------------------------
# Fused kernel, per grid step b (one image), channel-major (C, pixels):
#   1. y  = [W_init | W_reduce]^T @ x          one MXU matmul, bf16 in / f32 acc
#      xm = y[:Cout]                           initial_mapping
#      r  = relu(y[Cout:] * bn_s + bn_b)       reduce_mapping -> BN(eval) -> ReLU (f32)
#   2. kw = W_span_exp^T @ r + b_span_exp      span_mapping expanded to K*Cout rows
#                                              (bf16 operands, f32 acc)
#   3. 9-tap aggregation over the full Cout (no group loop):
#        out[c, p] = sum_k kw[k*Cout+c, p] * xm[c, p + d_k] * mask[k, p]
#      where d_k is the flat-pixel shift of tap k; shifts are static lane-offset slices of
#      a zero-extended VMEM copy of xm (XLU relayout work, off the VALU critical path) and
#      mask reproduces unfold's zero padding at the image border.
#   4. writeback is directly (Cout, HW) — already lane-dense, no transpose.
# --------------------------------------------------------------------------------------
def _involution_fused_kernel(x_ref, wcat_ref, bns_ref, bnb_ref, wspan_ref, bspan_ref,
                             mask_ref, o_ref, xm_ext_ref, *,
                             H, W, KH, KW, PH, PW, Cout, ext, compute_dtype):
    HW = H * W

    # -- 1. merged pointwise path (initial | reduce), one MXU matmul ----------------------
    x = x_ref[...].astype(compute_dtype)                                   # (Cin, HW) bf16
    y = jnp.dot(wcat_ref[...], x, preferred_element_type=jnp.float32)      # (Cout+Cr, HW) f32
    xm = y[:Cout, :]                                                        # initial_mapping
    # sublane (row) split at Cout is tile-aligned / free in channel-major layout
    r = jnp.maximum(y[Cout:, :] * bns_ref[...] + bnb_ref[...], 0.0)         # BN(eval)+ReLU, f32

    # -- 2. span_mapping, expanded to K*Cout rows (bf16 operands, f32 accumulation) -------
    kw = jnp.dot(wspan_ref[...], r.astype(compute_dtype),
                 preferred_element_type=jnp.float32) + bspan_ref[...]       # (K*Cout, HW) f32

    # -- 3. 9-tap aggregation --------------------------------------------------------------
    # zero-extend xm along the flat-pixel (lane) axis so each tap shift is a plain static
    # slice; all stores below are lane-tile aligned (ext and HW are multiples of 128).
    zero_band = jnp.zeros((Cout, ext), jnp.float32)
    xm_ext_ref[:, :ext] = zero_band
    xm_ext_ref[:, ext + HW:2 * ext + HW] = zero_band
    xm_ext_ref[:, ext:ext + HW] = xm
    xm_ext = xm_ext_ref[...]                                                # (Cout, HW + 2*ext)

    mask = mask_ref[...]                                                    # (K, HW)
    acc = jnp.zeros((Cout, HW), jnp.float32)
    for kh in range(KH):
        for kwi in range(KW):
            k = kh * KW + kwi
            d = (kh - PH) * W + (kwi - PW)            # flat-pixel shift of this tap
            sh = xm_ext[:, ext + d:ext + d + HW]      # static lane-offset slice (XLU work)
            acc = acc + kw[k * Cout:(k + 1) * Cout, :] * (sh * mask[k:k + 1, :])

    # -- 4. lane-dense writeback: (Cout, HW), minor dim HW >= 128, no transpose ------------
    o_ref[...] = acc.astype(o_ref.dtype)


def involution2d_forward(x_nchw, params, *, kernel_size=(3, 3), groups=4,
                         padding=(1, 1), compute_dtype=jnp.bfloat16):
    KH, KW = kernel_size
    PH, PW = padding
    B, Cin, H, W = x_nchw.shape
    HW = H * W
    w_init = params["w_init"]        # (Cin, Cout)
    w_reduce = params["w_reduce"]    # (Cin, Cr)
    bn_scale = params["bn_scale"]    # (Cr,)
    bn_bias = params["bn_bias"]      # (Cr,)
    w_span = params["w_span"]        # (Cr, G*K)
    b_span = params["b_span"]        # (G*K,)
    Cout = w_init.shape[1]
    Cr = w_reduce.shape[1]
    K = KH * KW
    CG = Cout // groups

    assert Cout % groups == 0
    assert HW % 128 == 0, "lane-dense (C, H*W) layout assumes H*W to be a multiple of 128"
    # TODO(synk): stride > 1 (AvgPool o_mapping + strided unfold) and dilation != 1 not implemented.

    # ---- one-time weight preprocessing (tiny; hoistable by the caller) -------------------
    # merged + transposed pointwise weight (channel-major: y = Wcat^T @ x)
    w_cat_t = jnp.concatenate([w_init, w_reduce], axis=1).T.astype(compute_dtype)  # (Cout+Cr, Cin)
    # span weight expanded so row (k*Cout + c) carries original span channel (c//CG)*K + k
    cols = np.empty((K * Cout,), np.int32)
    for k in range(K):
        for c in range(Cout):
            cols[k * Cout + c] = (c // CG) * K + k
    w_span_t = w_span[:, cols].T.astype(compute_dtype)                 # (K*Cout, Cr)
    b_span_e = b_span[cols].reshape(K * Cout, 1).astype(jnp.float32)   # (K*Cout, 1)
    bn_s = bn_scale.reshape(Cr, 1).astype(jnp.float32)
    bn_b = bn_bias.reshape(Cr, 1).astype(jnp.float32)

    # per-tap validity mask over flat pixels == nn.Unfold's zero padding (valid even if the
    # initial_mapping had a bias); static host-side constant, (K, HW) f32
    hh, ww = np.meshgrid(np.arange(H), np.arange(W), indexing="ij")
    mask_np = np.zeros((K, HW), np.float32)
    for kh in range(KH):
        for kwi in range(KW):
            valid = ((hh + kh - PH >= 0) & (hh + kh - PH < H) &
                     (ww + kwi - PW >= 0) & (ww + kwi - PW < W))
            mask_np[kh * KW + kwi] = valid.reshape(HW).astype(np.float32)
    mask = jnp.asarray(mask_np)

    # lane-tile aligned guard band for the zero-extended xm copy (>= PH*W + PW)
    ext = ((PH * W + PW + 127) // 128) * 128

    # activations: NCHW is already channel-major -> free reshape only, no pad/transpose/cast
    x_flat = x_nchw.reshape(B, Cin, HW)

    kernel = functools.partial(_involution_fused_kernel, H=H, W=W, KH=KH, KW=KW, PH=PH,
                               PW=PW, Cout=Cout, ext=ext, compute_dtype=compute_dtype)

    # Per-step VMEM (f32 words) ~= HW*(2*Cin + (Cout+Cr) + K*Cout + 2*Cout) + (HW+2*ext)*Cout
    # (~0.4 MB at demo shapes).  The (K*Cout, HW) span intermediate dominates as channels grow;
    # TODO(synk): chunk the span matmul + tap FMA per-tap when it nears the scoped-VMEM limit
    # (matters first on v7x's 64 MiB VMEM).
    out_flat = pl.pallas_call(
        kernel,
        out_shape=jax.ShapeDtypeStruct((B, Cout, HW), jnp.float32),
        grid_spec=pltpu.PrefetchScalarGridSpec(
            num_scalar_prefetch=0,
            grid=(B,),
            in_specs=[
                pl.BlockSpec((None, Cin, HW), lambda b: (b, 0, 0)),    # x (auto-pipelined)
                pl.BlockSpec((Cout + Cr, Cin), lambda b: (0, 0)),      # merged pointwise weight
                pl.BlockSpec((Cr, 1), lambda b: (0, 0)),               # BN scale
                pl.BlockSpec((Cr, 1), lambda b: (0, 0)),               # BN bias
                pl.BlockSpec((K * Cout, Cr), lambda b: (0, 0)),        # expanded span weight
                pl.BlockSpec((K * Cout, 1), lambda b: (0, 0)),         # expanded span bias
                pl.BlockSpec((K, HW), lambda b: (0, 0)),               # per-tap validity mask
            ],
            out_specs=pl.BlockSpec((None, Cout, HW), lambda b: (b, 0, 0)),
            scratch_shapes=[
                pltpu.VMEM((Cout, HW + 2 * ext), jnp.float32),         # zero-extended xm
            ],
        ),
        compiler_params=pltpu.CompilerParams(
            dimension_semantics=("parallel",)),
    )(x_flat, w_cat_t, bn_s, bn_b, w_span_t, b_span_e, mask)

    # free reshape: (B, Cout, H*W) -> NCHW
    return out_flat.reshape(B, Cout, H, W)


# Pure-JAX reference mirroring the PyTorch module with the same precision policy as the
# kernel (bf16 matmul operands, f32 accumulation / elementwise) for verification.
def involution2d_reference(x_nchw, params, *, kernel_size=(3, 3), groups=4, padding=(1, 1),
                           compute_dtype=jnp.bfloat16):
    KH, KW = kernel_size
    PH, PW = padding
    B, Cin, H, W = x_nchw.shape
    Cout = params["w_init"].shape[1]
    K = KH * KW
    CG = Cout // groups
    x = jnp.transpose(x_nchw, (0, 2, 3, 1)).astype(compute_dtype)
    xm = jnp.einsum("bhwi,io->bhwo", x, params["w_init"].astype(compute_dtype),
                    preferred_element_type=jnp.float32)
    red = jnp.einsum("bhwi,ir->bhwr", x, params["w_reduce"].astype(compute_dtype),
                     preferred_element_type=jnp.float32)
    r = jnp.maximum(red * params["bn_scale"] + params["bn_bias"], 0.0)
    kwmap = jnp.einsum("bhwr,rk->bhwk", r.astype(compute_dtype),
                       params["w_span"].astype(compute_dtype),
                       preferred_element_type=jnp.float32) + params["b_span"]
    xm_pad = jnp.pad(xm, ((0, 0), (PH, PH), (PW, PW), (0, 0)))
    out = jnp.zeros((B, H, W, Cout), jnp.float32)
    for g in range(groups):
        for kh in range(KH):
            for kwi in range(KW):
                k = kh * KW + kwi
                patch = xm_pad[:, kh:kh + H, kwi:kwi + W, g * CG:(g + 1) * CG]
                wgt = kwmap[:, :, :, g * K + k:g * K + k + 1]
                out = out.at[:, :, :, g * CG:(g + 1) * CG].add(wgt * patch)
    return jnp.transpose(out, (0, 3, 1, 2))


if __name__ == "__main__":
    # Small shapes consistent with the module: B=2, Cin=4, Cout=8, H=W=16,
    # groups=4, reduce_ratio=1, kernel 3x3, padding 1, stride 1.
    B, Cin, Cout, H, W = 2, 4, 8, 16, 16
    G = 4
    KH, KW = 3, 3
    reduce_ratio = 1
    Cr = Cout // reduce_ratio
    GK = G * KH * KW

    key = jax.random.PRNGKey(0)
    keys = jax.random.split(key, 8)
    x = jax.random.normal(keys[0], (B, Cin, H, W), jnp.float32)

    # Deterministic synthetic parameters (shapes follow the module's __init__).
    w_init = 0.1 * jax.random.normal(keys[1], (Cin, Cout), jnp.float32)    # initial_mapping 1x1 conv
    w_reduce = 0.1 * jax.random.normal(keys[2], (Cin, Cr), jnp.float32)    # reduce_mapping 1x1 conv
    gamma = 1.0 + 0.1 * jax.random.normal(keys[3], (Cr,), jnp.float32)     # BN weight
    beta = 0.1 * jax.random.normal(keys[4], (Cr,), jnp.float32)            # BN bias
    running_mean = jnp.zeros((Cr,), jnp.float32)
    running_var = jnp.ones((Cr,), jnp.float32)
    eps = 1e-5
    bn_scale = gamma / jnp.sqrt(running_var + eps)
    bn_bias = beta - running_mean * bn_scale
    w_span = 0.1 * jax.random.normal(keys[5], (Cr, GK), jnp.float32)       # span_mapping 1x1 conv
    b_span = 0.1 * jax.random.normal(keys[6], (GK,), jnp.float32)          # span_mapping bias

    params = dict(w_init=w_init, w_reduce=w_reduce, bn_scale=bn_scale,
                  bn_bias=bn_bias, w_span=w_span, b_span=b_span)

    fwd = jax.jit(functools.partial(involution2d_forward, kernel_size=(KH, KW), groups=G,
                                    padding=(1, 1), compute_dtype=jnp.bfloat16))
    out = fwd(x, params)
    out = jax.block_until_ready(out)

    ref = involution2d_reference(x, params, kernel_size=(KH, KW), groups=G, padding=(1, 1),
                                 compute_dtype=jnp.bfloat16)
    assert out.shape == (B, Cout, H, W), out.shape
    np.testing.assert_allclose(np.asarray(out), np.asarray(ref), rtol=2e-3, atol=2e-3)

    print("KERNEL_OK")
</pallas_src>

<mosaic_0001>
module attributes {stable_mosaic.version = 11 : i64} {
  func.func @_involution_fused_kernel(%arg0: i32, %arg1: memref<1x4x256xf32, #tpu.memory_space<vmem>>, %arg2: memref<16x4xbf16, #tpu.memory_space<vmem>>, %arg3: memref<8x1xf32, #tpu.memory_space<vmem>>, %arg4: memref<8x1xf32, #tpu.memory_space<vmem>>, %arg5: memref<72x8xbf16, #tpu.memory_space<vmem>>, %arg6: memref<72x1xf32, #tpu.memory_space<vmem>>, %arg7: memref<9x256xf32, #tpu.memory_space<vmem>>, %arg8: memref<1x8x256xf32, #tpu.memory_space<vmem>>, %arg9: memref<8x512xf32, #tpu.memory_space<vmem>>) attributes {dimension_semantics = [#tpu.dimension_semantics<parallel>], iteration_bounds = array<i64: 2>, scalar_prefetch = 0 : i64, scratch_operands = 1 : i64, tpu.core_type = #tpu.core_type<tc>, window_params = [{transform_indices = @transform_0, window_bounds = array<i64: 1, 4, 256>}, {pipeline_mode = #tpu.pipeline_mode<synchronous>, transform_indices = @transform_1, window_bounds = array<i64: 16, 4>}, {pipeline_mode = #tpu.pipeline_mode<synchronous>, transform_indices = @transform_2, window_bounds = array<i64: 8, 1>}, {pipeline_mode = #tpu.pipeline_mode<synchronous>, transform_indices = @transform_3, window_bounds = array<i64: 8, 1>}, {pipeline_mode = #tpu.pipeline_mode<synchronous>, transform_indices = @transform_4, window_bounds = array<i64: 72, 8>}, {pipeline_mode = #tpu.pipeline_mode<synchronous>, transform_indices = @transform_5, window_bounds = array<i64: 72, 1>}, {pipeline_mode = #tpu.pipeline_mode<synchronous>, transform_indices = @transform_6, window_bounds = array<i64: 9, 256>}, {transform_indices = @transform_7, window_bounds = array<i64: 1, 8, 256>}]} {
    %c0 = arith.constant 0 : index
    %c0_0 = arith.constant 0 : index
    %c0_1 = arith.constant 0 : index
    %0 = vector.load %arg1[%c0, %c0_0, %c0_1] : memref<1x4x256xf32, #tpu.memory_space<vmem>>, vector<1x4x256xf32>
    %1 = vector.shape_cast %0 : vector<1x4x256xf32> to vector<4x256xf32>
    %2 = arith.truncf %1 : vector<4x256xf32> to vector<4x256xbf16>
    %c0_2 = arith.constant 0 : index
    %c0_3 = arith.constant 0 : index
    %3 = vector.load %arg2[%c0_2, %c0_3] : memref<16x4xbf16, #tpu.memory_space<vmem>>, vector<16x4xbf16>
    %cst = arith.constant dense<0.000000e+00> : vector<16x256xf32>
    %4 = tpu.matmul %3, %2, %cst {dimension_numbers = #tpu.dot_dimension_numbers<[1], [0], [0], [1], [0, 0, 1, 1], [], []>} : vector<16x4xbf16>, vector<4x256xbf16>, vector<16x256xf32> -> vector<16x256xf32>
    %5 = vector.extract_strided_slice %4 {offsets = [0, 0], sizes = [8, 256], strides = [1, 1]} : vector<16x256xf32> to vector<8x256xf32>
    %6 = vector.extract_strided_slice %4 {offsets = [8, 0], sizes = [8, 256], strides = [1, 1]} : vector<16x256xf32> to vector<8x256xf32>
    %c0_4 = arith.constant 0 : index
    %c0_5 = arith.constant 0 : index
    %7 = vector.load %arg3[%c0_4, %c0_5] : memref<8x1xf32, #tpu.memory_space<vmem>>, vector<8x1xf32>
    %8 = vector.broadcast %7 : vector<8x1xf32> to vector<8x256xf32>
    %9 = arith.mulf %6, %8 : vector<8x256xf32>
    %c0_6 = arith.constant 0 : index
    %c0_7 = arith.constant 0 : index
    %10 = vector.load %arg4[%c0_6, %c0_7] : memref<8x1xf32, #tpu.memory_space<vmem>>, vector<8x1xf32>
    %11 = vector.broadcast %10 : vector<8x1xf32> to vector<8x256xf32>
    %12 = arith.addf %9, %11 : vector<8x256xf32>
    %cst_8 = arith.constant 0.000000e+00 : f32
    %13 = vector.broadcast %cst_8 : f32 to vector<8x256xf32>
    %14 = arith.maximumf %12, %13 : vector<8x256xf32>
    %c0_9 = arith.constant 0 : index
    %c0_10 = arith.constant 0 : index
    %15 = vector.load %arg5[%c0_9, %c0_10] : memref<72x8xbf16, #tpu.memory_space<vmem>>, vector<72x8xbf16>
    %16 = arith.truncf %14 : vector<8x256xf32> to vector<8x256xbf16>
    %cst_11 = arith.constant dense<0.000000e+00> : vector<72x256xf32>
    %17 = tpu.matmul %15, %16, %cst_11 {dimension_numbers = #tpu.dot_dimension_numbers<[1], [0], [0], [1], [0, 0, 1, 1], [], []>} : vector<72x8xbf16>, vector<8x256xbf16>, vector<72x256xf32> -> vector<72x256xf32>
    %c0_12 = arith.constant 0 : index
    %c0_13 = arith.constant 0 : index
    %18 = vector.load %arg6[%c0_12, %c0_13] : memref<72x1xf32, #tpu.memory_space<vmem>>, vector<72x1xf32>
    %19 = vector.broadcast %18 : vector<72x1xf32> to vector<72x256xf32>
    %20 = arith.addf %17, %19 : vector<72x256xf32>
    %cst_14 = arith.constant 0.000000e+00 : f32
    %21 = vector.broadcast %cst_14 : f32 to vector<8x128xf32>
    %c0_15 = arith.constant 0 : index
    %c0_16 = arith.constant 0 : index
    %22 = vector.load %arg9[%c0_15, %c0_16] : memref<8x512xf32, #tpu.memory_space<vmem>>, vector<8x128xf32>
    tpu.vector_store %arg9[%c0_15, %c0_16], %21 {strides = array<i32>} : memref<8x512xf32, #tpu.memory_space<vmem>>, vector<8x128xf32>,
    %c0_17 = arith.constant 0 : index
    %c384 = arith.constant 384 : index
    %23 = vector.load %arg9[%c0_17, %c384] : memref<8x512xf32, #tpu.memory_space<vmem>>, vector<8x128xf32>
    tpu.vector_store %arg9[%c0_17, %c384], %21 {strides = array<i32>} : memref<8x512xf32, #tpu.memory_space<vmem>>, vector<8x128xf32>,
    %c0_18 = arith.constant 0 : index
    %c128 = arith.constant 128 : index
    %24 = vector.load %arg9[%c0_18, %c128] : memref<8x512xf32, #tpu.memory_space<vmem>>, vector<8x256xf32>
    tpu.vector_store %arg9[%c0_18, %c128], %5 {strides = array<i32>} : memref<8x512xf32, #tpu.memory_space<vmem>>, vector<8x256xf32>,
    %c0_19 = arith.constant 0 : index
    %c0_20 = arith.constant 0 : index
    %25 = vector.load %arg9[%c0_19, %c0_20] : memref<8x512xf32, #tpu.memory_space<vmem>>, vector<8x512xf32>
    %c0_21 = arith.constant 0 : index
    %c0_22 = arith.constant 0 : index
    %26 = vector.load %arg7[%c0_21, %c0_22] : memref<9x256xf32, #tpu.memory_space<vmem>>, vector<9x256xf32>
    %cst_23 = arith.constant 0.000000e+00 : f32
    %27 = vector.broadcast %cst_23 : f32 to vector<8x256xf32>
    %28 = vector.extract_strided_slice %25 {offsets = [0, 111], sizes = [8, 256], strides = [1, 1]} : vector<8x512xf32> to vector<8x256xf32>
    %29 = vector.extract_strided_slice %20 {offsets = [0, 0], sizes = [8, 256], strides = [1, 1]} : vector<72x256xf32> to vector<8x256xf32>
    %30 = vector.extract_strided_slice %26 {offsets = [0, 0], sizes = [1, 256], strides = [1, 1]} : vector<9x256xf32> to vector<1x256xf32>
    %31 = vector.broadcast %30 : vector<1x256xf32> to vector<8x256xf32>
    %32 = arith.mulf %28, %31 : vector<8x256xf32>
    %33 = arith.mulf %29, %32 : vector<8x256xf32>
    %34 = arith.addf %27, %33 : vector<8x256xf32>
    %35 = vector.extract_strided_slice %25 {offsets = [0, 112], sizes = [8, 256], strides = [1, 1]} : vector<8x512xf32> to vector<8x256xf32>
    %36 = vector.extract_strided_slice %20 {offsets = [8, 0], sizes = [8, 256], strides = [1, 1]} : vector<72x256xf32> to vector<8x256xf32>
    %37 = vector.extract_strided_slice %26 {offsets = [1, 0], sizes = [1, 256], strides = [1, 1]} : vector<9x256xf32> to vector<1x256xf32>
    %38 = vector.broadcast %37 : vector<1x256xf32> to vector<8x256xf32>
    %39 = arith.mulf %35, %38 : vector<8x256xf32>
    %40 = arith.mulf %36, %39 : vector<8x256xf32>
    %41 = arith.addf %34, %40 : vector<8x256xf32>
    %42 = vector.extract_strided_slice %25 {offsets = [0, 113], sizes = [8, 256], strides = [1, 1]} : vector<8x512xf32> to vector<8x256xf32>
    %43 = vector.extract_strided_slice %20 {offsets = [16, 0], sizes = [8, 256], strides = [1, 1]} : vector<72x256xf32> to vector<8x256xf32>
    %44 = vector.extract_strided_slice %26 {offsets = [2, 0], sizes = [1, 256], strides = [1, 1]} : vector<9x256xf32> to vector<1x256xf32>
    %45 = vector.broadcast %44 : vector<1x256xf32> to vector<8x256xf32>
    %46 = arith.mulf %42, %45 : vector<8x256xf32>
    %47 = arith.mulf %43, %46 : vector<8x256xf32>
    %48 = arith.addf %41, %47 : vector<8x256xf32>
    %49 = vector.extract_strided_slice %25 {offsets = [0, 127], sizes = [8, 256], strides = [1, 1]} : vector<8x512xf32> to vector<8x256xf32>
    %50 = vector.extract_strided_slice %20 {offsets = [24, 0], sizes = [8, 256], strides = [1, 1]} : vector<72x256xf32> to vector<8x256xf32>
    %51 = vector.extract_strided_slice %26 {offsets = [3, 0], sizes = [1, 256], strides = [1, 1]} : vector<9x256xf32> to vector<1x256xf32>
    %52 = vector.broadcast %51 : vector<1x256xf32> to vector<8x256xf32>
    %53 = arith.mulf %49, %52 : vector<8x256xf32>
    %54 = arith.mulf %50, %53 : vector<8x256xf32>
    %55 = arith.addf %48, %54 : vector<8x256xf32>
    %56 = vector.extract_strided_slice %25 {offsets = [0, 128], sizes = [8, 256], strides = [1, 1]} : vector<8x512xf32> to vector<8x256xf32>
    %57 = vector.extract_strided_slice %20 {offsets = [32, 0], sizes = [8, 256], strides = [1, 1]} : vector<72x256xf32> to vector<8x256xf32>
    %58 = vector.extract_strided_slice %26 {offsets = [4, 0], sizes = [1, 256], strides = [1, 1]} : vector<9x256xf32> to vector<1x256xf32>
    %59 = vector.broadcast %58 : vector<1x256xf32> to vector<8x256xf32>
    %60 = arith.mulf %56, %59 : vector<8x256xf32>
    %61 = arith.mulf %57, %60 : vector<8x256xf32>
    %62 = arith.addf %55, %61 : vector<8x256xf32>
    %63 = vector.extract_strided_slice %25 {offsets = [0, 129], sizes = [8, 256], strides = [1, 1]} : vector<8x512xf32> to vector<8x256xf32>
    %64 = vector.extract_strided_slice %20 {offsets = [40, 0], sizes = [8, 256], strides = [1, 1]} : vector<72x256xf32> to vector<8x256xf32>
    %65 = vector.extract_strided_slice %26 {offsets = [5, 0], sizes = [1, 256], strides = [1, 1]} : vector<9x256xf32> to vector<1x256xf32>
    %66 = vector.broadcast %65 : vector<1x256xf32> to vector<8x256xf32>
    %67 = arith.mulf %63, %66 : vector<8x256xf32>
    %68 = arith.mulf %64, %67 : vector<8x256xf32>
    %69 = arith.addf %62, %68 : vector<8x256xf32>
    %70 = vector.extract_strided_slice %25 {offsets = [0, 143], sizes = [8, 256], strides = [1, 1]} : vector<8x512xf32> to vector<8x256xf32>
    %71 = vector.extract_strided_slice %20 {offsets = [48, 0], sizes = [8, 256], strides = [1, 1]} : vector<72x256xf32> to vector<8x256xf32>
    %72 = vector.extract_strided_slice %26 {offsets = [6, 0], sizes = [1, 256], strides = [1, 1]} : vector<9x256xf32> to vector<1x256xf32>
    %73 = vector.broadcast %72 : vector<1x256xf32> to vector<8x256xf32>
    %74 = arith.mulf %70, %73 : vector<8x256xf32>
    %75 = arith.mulf %71, %74 : vector<8x256xf32>
    %76 = arith.addf %69, %75 : vector<8x256xf32>
    %77 = vector.extract_strided_slice %25 {offsets = [0, 144], sizes = [8, 256], strides = [1, 1]} : vector<8x512xf32> to vector<8x256xf32>
    %78 = vector.extract_strided_slice %20 {offsets = [56, 0], sizes = [8, 256], strides = [1, 1]} : vector<72x256xf32> to vector<8x256xf32>
    %79 = vector.extract_strided_slice %26 {offsets = [7, 0], sizes = [1, 256], strides = [1, 1]} : vector<9x256xf32> to vector<1x256xf32>
    %80 = vector.broadcast %79 : vector<1x256xf32> to vector<8x256xf32>
    %81 = arith.mulf %77, %80 : vector<8x256xf32>
    %82 = arith.mulf %78, %81 : vector<8x256xf32>
    %83 = arith.addf %76, %82 : vector<8x256xf32>
    %84 = vector.extract_strided_slice %25 {offsets = [0, 145], sizes = [8, 256], strides = [1, 1]} : vector<8x512xf32> to vector<8x256xf32>
    %85 = vector.extract_strided_slice %20 {offsets = [64, 0], sizes = [8, 256], strides = [1, 1]} : vector<72x256xf32> to vector<8x256xf32>
    %86 = vector.extract_strided_slice %26 {offsets = [8, 0], sizes = [1, 256], strides = [1, 1]} : vector<9x256xf32> to vector<1x256xf32>
    %87 = vector.broadcast %86 : vector<1x256xf32> to vector<8x256xf32>
    %88 = arith.mulf %84, %87 : vector<8x256xf32>
    %89 = arith.mulf %85, %88 : vector<8x256xf32>
    %90 = arith.addf %83, %89 : vector<8x256xf32>
    %c0_24 = arith.constant 0 : index
    %c0_25 = arith.constant 0 : index
    %c0_26 = arith.constant 0 : index
    %91 = vector.load %arg8[%c0_24, %c0_25, %c0_26] : memref<1x8x256xf32, #tpu.memory_space<vmem>>, vector<1x8x256xf32>
    %92 = vector.shape_cast %91 : vector<1x8x256xf32> to vector<8x256xf32>
    %93 = vector.shape_cast %90 : vector<8x256xf32> to vector<1x8x256xf32>
    tpu.vector_store %arg8[%c0_24, %c0_25, %c0_26], %93 {strides = array<i32>} : memref<1x8x256xf32, #tpu.memory_space<vmem>>, vector<1x8x256xf32>,
    return
  }
  func.func @transform_0(%arg0: i32) -> (i32, i32, i32) {
    %c0_i32 = arith.constant 0 : i32
    %c0_i32_0 = arith.constant 0 : i32
    %c0_i32_1 = arith.constant 0 : i32
    return %arg0, %c0_i32, %c0_i32_0 : i32, i32, i32
  }
  func.func @transform_1(%arg0: i32) -> (i32, i32) {
    %c0_i32 = arith.constant 0 : i32
    %c0_i32_0 = arith.constant 0 : i32
    %c0_i32_1 = arith.constant 0 : i32
    return %c0_i32, %c0_i32_0 : i32, i32
  }
  func.func @transform_2(%arg0: i32) -> (i32, i32) {
    %c0_i32 = arith.constant 0 : i32
    %c0_i32_0 = arith.constant 0 : i32
    %c0_i32_1 = arith.constant 0 : i32
    return %c0_i32, %c0_i32_0 : i32, i32
  }
  func.func @transform_3(%arg0: i32) -> (i32, i32) {
    %c0_i32 = arith.constant 0 : i32
    %c0_i32_0 = arith.constant 0 : i32
    %c0_i32_1 = arith.constant 0 : i32
    return %c0_i32, %c0_i32_0 : i32, i32
  }
  func.func @transform_4(%arg0: i32) -> (i32, i32) {
    %c0_i32 = arith.constant 0 : i32
    %c0_i32_0 = arith.constant 0 : i32
    %c0_i32_1 = arith.constant 0 : i32
    return %c0_i32, %c0_i32_0 : i32, i32
  }
  func.func @transform_5(%arg0: i32) -> (i32, i32) {
    %c0_i32 = arith.constant 0 : i32
    %c0_i32_0 = arith.constant 0 : i32
    %c0_i32_1 = arith.constant 0 : i32
    return %c0_i32, %c0_i32_0 : i32, i32
  }
  func.func @transform_6(%arg0: i32) -> (i32, i32) {
    %c0_i32 = arith.constant 0 : i32
    %c0_i32_0 = arith.constant 0 : i32
    %c0_i32_1 = arith.constant 0 : i32
    return %c0_i32, %c0_i32_0 : i32, i32
  }
  func.func @transform_7(%arg0: i32) -> (i32, i32, i32) {
    %c0_i32 = arith.constant 0 : i32
    %c0_i32_0 = arith.constant 0 : i32
    %c0_i32_1 = arith.constant 0 : i32
    return %arg0, %c0_i32, %c0_i32_0 : i32, i32, i32
  }
}

</mosaic_0001>

<bundles_post_ra>
// kernel: involution2d_forward.1
= control target key start
LH: loop header
LB: loop body
LE: loop exit
PB: predicated region body
PF: predicated region fallthrough
CT: control target
= control target key end

     0   :  { %s1002_s24 = smov 0   ;;  %s1266_s0 = inlined_call_operand.vmem [shape: f32[2,4,256], index: 0, kind: input, shape index: {}]   ;;  %s1267_s1 = inlined_call_operand.vmem [shape: bf16[16,4], index: 1, kind: input, shape index: {}]   ;;  %s1268_s2 = inlined_call_operand.vmem [shape: f32[8,1], index: 2, kind: input, shape index: {}]   ;;  %s1269_s3 = inlined_call_operand.vmem [shape: f32[8,1], index: 3, kind: input, shape index: {}]   ;;  %s1270_s4 = inlined_call_operand.vmem [shape: bf16[72,8], index: 4, kind: input, shape index: {}]   ;;  %s1271_s5 = inlined_call_operand.vmem [shape: f32[72,1], index: 5, kind: input, shape index: {}]   ;;  %s1272_s6 = inlined_call_operand.vmem [shape: f32[9,256], index: 6, kind: input, shape index: {}]   ;;  %s1273_s7 = inlined_call_operand.vmem [shape: f32[2,8,256], index: 7, kind: output, shape index: {}]  }
   0x1 LB: > { %s871_s25 = sadd.s32 4294967295, %s951_s24   ;;  %p875_p0 = scmp.ge.s32.totalorder %s951_s24, 1  ;;  %s951_s24 = sphi %s1002_s24, %s17_s24  }
   0x2   : > { %p237_p1 = scmp.lt.s32.totalorder %s951_s24, 3 }
   0x4   : > { %p238_p2 = pnand %p875_p0, %p237_p1 }
   0x5   : > { %p269_p3 = scmp.lt.s32.totalorder (!%p238_p2), %s871_s25, 1  ;;  %s955_s15 = smov (!%p238_p2), 112  }
   0x6   : > { %241 = sbr.rel (%p238_p2) target bundleno = 349 (0x15d), region = 48  ;;  %s956_s16 = smov (!%p238_p2), 113  }
   0x7   : > { %s957_s17 = smov (!%p238_p2), 127   ;;  %s958_s18 = smov (!%p238_p2), 1  }
   0x8   : > { %s959_s19 = smov (!%p238_p2), 15   ;;  %s960_s20 = smov (!%p238_p2), 16  }
   0x9   : > { %s961_s27 = smov (!%p238_p2), 17  }
   0xb   : > { %v366_v0 = vld [vmem:[%s1271_s5 + $0x10] sm:$0xff]  ;;  %v364_v1 = vld [vmem:[%s1271_s5] sm:$0xff]  ;;  %v953_v3 = vmov 0   ;;  %s1275_s25 = smov (!%p269_p3, %s871_s25), 1  ;;  %v367_v5 = vld [vmem:[%s1271_s5 + $0x18] sm:$0xff]  ;;  %vm300_vm0 = vcmask 1041408  }
   0xc   : > { %v335_v2 = vld [vmem:[%s1268_s2] sm:$0xff]  ;;  %942 = vset.pattern.permute.xlu2 %v953_v3  ;;  %941 = vset.pattern.permute.xlu1 %v953_v3  ;;  %s914_s9 = sshll.u32 %s1275_s25, 3  ;;  %v365_v6 = vld [vmem:[%s1271_s5 + $0x8] sm:$0xff]  ;;  %v370_v10 = vld [vmem:[%s1271_s5 + $0x30] sm:$0xff]  ;;  %vm296_vm1 = vcmask 31744   ;;  %vm584_vm2 = vcmask 916480  }
   0xd   : > { %940 = vset.pattern.permute.xlu0 %v953_v3  ;;  %385 = vperm.xlu2 %942, %v366_v0   ;;  %s273_s12 = scalar_lea.vmem %s1266_s0, %s914_s9  ;;  %v343_v7 = vld [vmem:[%s1269_s3] sm:$0xff]  ;;  %v369_v13 = vld [vmem:[%s1271_s5 + $0x28] sm:$0xff]  ;;  %v371_v21 = vld [vmem:[%s1271_s5 + $0x38] sm:$0xff]  ;;  %vm618_vm3 = vcmask 924672   ;;  %vm457_vm4 = vcmask 1043456   ;;  %vm652_vm5 = vcmask 1039360  }
   0xe   : > { %375 = vperm.xlu1 %941, %v364_v1   ;;  %338 = vperm.xlu0 %940, %v335_v2   ;;  %v280_v4 = vld [vmem:[%s273_s12] sm:$0xff]  ;;  %s954_s12 = smov 111   ;;  %v1062_v22 = vld [vmem:[%s1272_s6 + $0x8] sm:$0xff]  ;;  %v943_v35 = vld [vmem:[%s1272_s6 + $0x10] ss:$0 sm:$0xff]  ;;  %vm441_vm6 = vcmask 64512  }
   0xf   : > { %282 = vst [vmem:[#allocation1] ss:$2 sm:$0xff] %v280_v4  ;;  %v368_v14 = vld [vmem:[%s1271_s5 + $0x20] sm:$0xff]  ;;  %v577_v23 = vperm.slane %v1062_v22, 1  ;;  %v543_v25 = vperm.slane %v1062_v22, 0  ;;  %v611_v26 = vperm.slane %v1062_v22, 2 }
  0x10   : > { %v916_v17 = vld [vmem:[%s1267_s1] sm:$0xff]  ;;  %v645_v30 = vperm.slane %v1062_v22, 3  ;;  %v687_v31 = vperm.slane %v1062_v22, 5  ;;  %v719_v32 = vperm.slane %v1062_v22, 6  ;;  %v751_v36 = vperm.slane %v1062_v22, 7 }
  0x11   : > { %v1049_v18 = vld [vmem:[%s1272_s6] sm:$0xff]  ;;  %v944_v37 = vld [vmem:[%s1272_s6 + $0x18] ss:$0 sm:$0xff]  ;;  %vm669_vm7 = vcmask 7168   ;;  %vm550_vm8 = vcmask 908288   ;;  %vm635_vm9 = vcmask 121856  }
  0x12   : > { %v542_v19 = vperm.slane %v1049_v18, 0  ;;  %v372_v20 = vld [vmem:[%s1271_s5 + $0x40] sm:$0xff]  ;;  %v576_v24 = vperm.slane %v1049_v18, 1  ;;  %v610_v27 = vperm.slane %v1049_v18, 2  ;;  %v644_v28 = vperm.slane %v1049_v18, 3 }
  0x13   : > { %v686_v29 = vperm.slane %v1049_v18, 5  ;;  %v718_v33 = vperm.slane %v1049_v18, 6  ;;  %v750_v34 = vperm.slane %v1049_v18, 7  ;;  %vm601_vm10 = vcmask 130048  }
  0x14   : > { %vm567_vm11 = vcmask 138240  }
  0x15   : > { %390 = vperm.xlu2 %942, %v367_v5  }
  0x16   : > { %380 = vperm.xlu1 %941, %v365_v6   ;;  %346 = vperm.xlu0 %940, %v343_v7   ;;  %v283_v8 = vld.sshfl [vmem:[#allocation1] sm:$0xff pattern:$0x75316420]  ;;  %v284_v9 = vld.sshfl [vmem:[#allocation1 + $0x8] sm:$0xff pattern:$0x75316420] }
  0x17   : > { %v287_v11 = vpack.c.bf16 %v283_v8, %v283_v8  ;;  %v288_v12 = vpack.c.bf16 %v284_v9, %v284_v9 }
  0x19   : > { %v302_v15 = vsel %vm300_vm0, %v287_v11, 0  ;;  %v305_v16 = vsel %vm300_vm0, %v288_v12, 0 }
  0x1a   : > { %314 = vmatpush.bf16.msra.mxu0 %v302_v15  ;;  %328 = vmatpush.bf16.msra.mxu1 %v305_v16 }
  0x1d   : > { %405 = vperm.xlu2 %942, %v370_v10   ;;  %884 = vmatmul.msk.bf16.vlgmr.msra.gmra.mxu0 %vm296_vm1, %v916_v17 }
  0x1e   : > { %400 = vperm.xlu1 %941, %v369_v13   ;;  %395 = vperm.xlu0 %940, %v368_v14   ;;  %v917_v13 = vld [vmem:[%s1270_s4] sm:$0xff]  ;;  %v919_v14 = vld [vmem:[%s1270_s4 + $0x10] sm:$0xff] }
  0x1f   : > { %885 = vmatmul.msk.bf16.vlgmr.msra.gmra.mxu1 %vm296_vm1, %v916_v17 }
  0x25   : > { %546 = vrot.lane.b32.xlu2 %v542_v19, %s954_s12 }
  0x26   : > { %415 = vperm.xlu1 %941, %v372_v20   ;;  %410 = vperm.xlu0 %940, %v371_v21  }
  0x2d   : > { %582 = vrot.lane.b32.xlu2 %v577_v23, %s955_s15 }
  0x2e   : > { %580 = vrot.lane.b32.xlu1 %v576_v24, %s955_s15  ;;  %548 = vrot.lane.b32.xlu0 %v543_v25, %s954_s12 }
  0x35   : > { %616 = vrot.lane.b32.xlu2 %v611_v26, %s956_s16 }
  0x36   : > { %614 = vrot.lane.b32.xlu1 %v610_v27, %s956_s16  ;;  %648 = vrot.lane.b32.xlu0 %v644_v28, %s957_s17 }
  0x3d   : > { %690 = vrot.lane.b32.xlu2 %v686_v29, %s958_s18 }
  0x3e   : > { %650 = vrot.lane.b32.xlu1 %v645_v30, %s957_s17  ;;  %692 = vrot.lane.b32.xlu0 %v687_v31, %s958_s18  ;;  %v918_v31 = vld [vmem:[%s1270_s4 + $0x8] sm:$0xff] }
  0x45   : > { %724 = vrot.lane.b32.xlu2 %v719_v32, %s959_s19  ;;  %v920_v32 = vld [vmem:[%s1270_s4 + $0x18] sm:$0xff] }
  0x46   : > { %722 = vrot.lane.b32.xlu1 %v718_v33, %s959_s19  ;;  %754 = vrot.lane.b32.xlu0 %v750_v34, %s960_s20 }
  0x4d   : > { %786 = vrot.lane.b32.xlu2 %v943_v35, %s961_s27 }
  0x4e   : > { %756 = vrot.lane.b32.xlu1 %v751_v36, %s960_s20  ;;  %788 = vrot.lane.b32.xlu0 %v944_v37, %s961_s27 }
  0x67   : > { %v1098_v38 = vpop.permute.xlu2 %385 }
  0x6f   : > { %v1100_v39 = vpop.permute.xlu2 %390 }
  0x77   : > { %v1102_v40 = vpop.permute.xlu2 %405 }
  0x7f   : > { %v1104_v41 = vpop.permute.xlu2 %546 }
  0x80   : > { %v555_v42 = vmul.f32 0.0, %v1104_v41  ;;  %v1107_v43 = vpop.permute.xlu1 %375  ;;  %v339_v44 = vpop.permute.xlu0 %338 }
  0x82   : > { %561 = vrot.lane.b32.xlu1 %v555_v42, %s961_s27  ;;  %v361_v42 = vld [vmem:[%s1270_s4 + $0x20] sm:$0xf] }
  0x87   : > { %v1116_v49 = vpop.permute.xlu2 %582 }
  0x88   : > { %v1110_v45 = vpop.permute.xlu1 %380  ;;  %v347_v46 = vpop.permute.xlu0 %346 }
  0x8f   : > { %v1130_v58 = vpop.permute.xlu2 %616 }
  0x90   : > { %v1112_v47 = vpop.permute.xlu1 %400  ;;  %v1114_v48 = vpop.permute.xlu0 %395 }
  0x97   : > { %v691_v8 = vpop.permute.xlu2 %690 }
  0x98   : > { %v1118_v50 = vpop.permute.xlu1 %415  ;;  %v1120_v51 = vpop.permute.xlu0 %410 }
  0x9a   : > { %v1122_v52 = vpop.f32.mrf.mxu0 }
  0x9b   : > { %v698_v35 = vmul.f32 %v691_v8, %v1122_v52 }
  0x9c   : > { %v1124_v53 = vpop.f32.mrf.mxu1 }
  0x9f   : > { %v725_v24 = vpop.permute.xlu2 %724 }
  0xa0   : > { %v581_v54 = vpop.permute.xlu1 %580  ;;  %v1126_v55 = vpop.permute.xlu0 %548  ;;  %v732_v25 = vmul.f32 0.0, %v725_v24 }
  0xa1   : > { %v585_v56 = vsel %vm584_vm2, %v581_v54, %v1116_v49  ;;  %v589_v57 = vmul.f32 0.0, %v581_v54  ;;  %v557_v27 = vmul.f32 %v1126_v55, %v1124_v53  ;;  %v551_v30 = vsel %vm550_vm8, %v1104_v41, %v1126_v55 }
  0xa2   : > { %v590_v59 = vmul.f32 %v585_v56, %v1122_v52  ;;  %v318_v60 = vpop.f32.mrf.mxu0  ;;  %v556_v34 = vmul.f32 %v551_v30, %v1122_v52  ;;  %v591_v54 = vmul.f32 %v1116_v49, %v1124_v53  ;;  %v435_v55 = vunpack.c.l.b16 %v361_v42 }
  0xa3   : > { %595 = vrot.lane.b32.xlu0 %v589_v57, %s960_s20  ;;  %v341_v61 = vmul.f32 %v339_v44, %v318_v60  ;;  %v625_v49 = vmul.f32 %v1130_v58, %v1124_v53 }
  0xa4   : > { %597 = vrot.lane.b32.xlu1 %v590_v59, %s960_s20  ;;  %v332_v62 = vpop.f32.mrf.mxu1  ;;  %v440_v59 = vpack.c.b16 %v435_v55, %v435_v55 }
  0xa5   : > { %v349_v63 = vadd.f32 %v347_v46, %v341_v61  ;;  %v342_v0 = vmul.f32 %v339_v44, %v332_v62 }
  0xa7   : > { %v350_v5 = vadd.f32 %v347_v46, %v342_v0  ;;  %v351_v7 = vmax.f32 %v349_v63, 0.0  ;;  %v787_v60 = vpop.permute.xlu2 %786 }
  0xa8   : > { %v615_v1 = vpop.permute.xlu1 %614  ;;  %v649_v2 = vpop.permute.xlu0 %648  ;;  %v794_v0 = vmul.f32 %v787_v60, %v1122_v52 }
  0xa9   : > { %v619_v3 = vsel %vm618_vm3, %v615_v1, %v1130_v58  ;;  %v623_v4 = vmul.f32 0.0, %v615_v1  ;;  %v362_v9 = vpack.c.bf16 %v351_v7, %v351_v7  ;;  %v352_v10 = vmax.f32 %v350_v5, 0.0 }
  0xaa   : > { %v624_v6 = vmul.f32 %v619_v3, %v1122_v52  ;;  %v657_v15 = vmul.f32 0.0, %v649_v2 }
  0xab   : > { %629 = vrot.lane.b32.xlu0 %v623_v4, %s959_s19  ;;  %v459_v11 = vsel %vm457_vm4, %v362_v9, 0  ;;  %v363_v12 = vpack.c.bf16 %v352_v10, %v352_v10 }
  0xac   : > { %631 = vrot.lane.b32.xlu1 %v624_v6, %s959_s19  ;;  %471 = vmatpush.bf16.msrb.mxu0 %v459_v11 }
  0xad   : > { %921 = vmatpush.bf16.msra.mxu2 %v459_v11  ;;  %v462_v19 = vsel %vm457_vm4, %v363_v12, 0 }
  0xae   : > { %504 = vmatpush.bf16.msrb.mxu1 %v462_v19  ;;  %922 = vmatpush.bf16.msra.mxu3 %v462_v19 }
  0xaf   : > { %902 = vmatmul.msk.bf16.vlgmr.msrb.gmra.mxu0 %vm441_vm6, %v917_v13 }
  0xb0   : > { %v1147_v16 = vpop.permute.xlu1 %650  ;;  %v693_v17 = vpop.permute.xlu0 %692  ;;  %904 = vmatmul.msk.bf16.vlgmr.msra.gmra.mxu2 %vm441_vm6, %v919_v14 }
  0xb1   : > { %v653_v20 = vsel %vm652_vm5, %v649_v2, %v1147_v16  ;;  %v700_v21 = vmul.f32 0.0, %v693_v17  ;;  %907 = vmatmul.msk.bf16.vlgmr.msrb.gmra.mxu1 %vm441_vm6, %v917_v13  ;;  %909 = vmatmul.msk.bf16.vlgmr.msra.gmra.mxu3 %vm441_vm6, %v919_v14  ;;  %v694_v26 = vsel %vm669_vm7, %v691_v8, %v693_v17  ;;  %v659_v1 = vmul.f32 %v1147_v16, %v1124_v53 }
  0xb2   : > { %v658_v23 = vmul.f32 %v653_v20, %v1122_v52  ;;  %v699_v28 = vmul.f32 %v694_v26, %v1124_v53 }
  0xb3   : > { %663 = vrot.lane.b32.xlu0 %v657_v15, %s958_s18  ;;  %708 = vrot.lane.b32.xlu2 %v700_v21, %s957_s17 }
  0xb4   : > { %665 = vrot.lane.b32.xlu1 %v658_v23, %s958_s18 }
  0xb8   : > { %v723_v29 = vpop.permute.xlu1 %722  ;;  %v755_v37 = vpop.permute.xlu0 %754 }
  0xb9   : > { %v726_v33 = vsel %vm635_vm9, %v723_v29, %v725_v24  ;;  %v730_v46 = vmul.f32 %v723_v29, %v1122_v52  ;;  %v762_v62 = vmul.f32 %v755_v37, %v1122_v52 }
  0xba   : > { %v731_v36 = vmul.f32 %v726_v33, %v1124_v53 }
  0xbb   : > { %740 = vrot.lane.b32.xlu2 %v732_v25, %s956_s16  ;;  %565 = vrot.lane.b32.xlu0 %v557_v27, %s961_s27 }
  0xbc   : > { %706 = vrot.lane.b32.xlu1 %v699_v28, %s957_s17 }
  0xbf   : > { %903 = vmatmul.msk.bf16.gmra.mxu0 %vm441_vm6, %v918_v31 }
  0xc0   : > { %905 = vmatmul.msk.bf16.gmra.mxu2 %vm441_vm6, %v920_v32  ;;  %v757_v41 = vpop.permute.xlu1 %756  ;;  %v789_v57 = vpop.permute.xlu0 %788 }
  0xc1   : > { %908 = vmatmul.msk.bf16.gmra.mxu1 %vm441_vm6, %v918_v31  ;;  %910 = vmatmul.msk.bf16.gmra.mxu3 %vm441_vm6, %v920_v32  ;;  %v758_v44 = vsel %vm601_vm10, %v755_v37, %v757_v41  ;;  %v790_v61 = vsel %vm567_vm11, %v787_v60, %v789_v57  ;;  %v764_v58 = vmul.f32 0.0, %v757_v41  ;;  %v796_v2 = vmul.f32 0.0, %v789_v57 }
  0xc2   : > { %v763_v56 = vmul.f32 %v758_v44, %v1124_v53  ;;  %v795_v63 = vmul.f32 %v790_v61, %v1124_v53 }
  0xc3   : > { %704 = vrot.lane.b32.xlu0 %v698_v35, %s957_s17  ;;  %563 = vrot.lane.b32.xlu2 %v556_v34, %s961_s27 }
  0xc4   : > { %738 = vrot.lane.b32.xlu1 %v731_v36, %s956_s16 }
  0xcb   : > { %736 = vrot.lane.b32.xlu0 %v730_v46, %s956_s16  ;;  %599 = vrot.lane.b32.xlu2 %v591_v54, %s960_s20  ;;  %v678_v46 = vperm.slane %v1049_v18, 4 }
  0xcc   : > { %770 = vrot.lane.b32.xlu1 %v763_v56, %s955_s15 }
  0xd0   : > { %906 = vmatmul.msk.bf16.gmra.mxu2 %vm441_vm6, %v440_v59 }
  0xd1   : > { %911 = vmatmul.msk.bf16.gmra.mxu3 %vm441_vm6, %v440_v59 }
  0xd3   : > { %768 = vrot.lane.b32.xlu0 %v762_v62, %s955_s15  ;;  %633 = vrot.lane.b32.xlu2 %v625_v49, %s959_s19 }
  0xd4   : > { %802 = vrot.lane.b32.xlu1 %v795_v63, %s954_s12 }
  0xdb   : > { %800 = vrot.lane.b32.xlu0 %v794_v0, %s954_s12  ;;  %667 = vrot.lane.b32.xlu2 %v659_v1, %s958_s18  ;;  %v680_v1 = vmul.f32 %v678_v46, %v1122_v52 }
  0xe3   : > { %772 = vrot.lane.b32.xlu2 %v764_v58, %s955_s15 }
  0xeb   : > { %804 = vrot.lane.b32.xlu2 %v796_v2, %s954_s12  ;;  %s915_s12 = sshll.u32 %s1275_s25, 4 }
  0xec   : > { %s278_s17 = scalar_lea.vmem %s1273_s7, %s915_s12 }
  0xf4   : > { %v562_v4 = vpop.permute.xlu1 %561 }
 0x10d   : > { %v1215_v3 = vpop.permute.xlu2 %708 }
 0x115   : > { %v596_v5 = vpop.permute.xlu0 %595  ;;  %v1217_v6 = vpop.permute.xlu2 %740 }
 0x116   : > { %v598_v7 = vpop.permute.xlu1 %597 }
 0x117   : > { %v602_v37 = vsel %vm601_vm10, %v596_v5, %v598_v7 }
 0x11d   : > { %v630_v8 = vpop.permute.xlu0 %629  ;;  %v564_v9 = vpop.permute.xlu2 %563 }
 0x11e   : > { %v632_v10 = vpop.permute.xlu1 %631  ;;  %v568_v55 = vsel %vm567_vm11, %v562_v4, %v564_v9 }
 0x11f   : > { %v636_v56 = vsel %vm635_vm9, %v630_v8, %v632_v10 }
 0x125   : > { %v664_v11 = vpop.permute.xlu0 %663  ;;  %v600_v12 = vpop.permute.xlu2 %599 }
 0x126   : > { %v666_v14 = vpop.permute.xlu1 %665  ;;  %v603_v44 = vsel %vm601_vm10, %v598_v7, %v600_v12 }
 0x127   : > { %v670_v5 = vsel %vm669_vm7, %v664_v11, %v666_v14 }
 0x12c   : > { %v473_v15 = vpop.f32.mrf.mxu0 }
 0x12d   : > { %v566_v13 = vpop.permute.xlu0 %565  ;;  %v634_v17 = vpop.permute.xlu2 %633  ;;  %v474_v35 = vadd.f32 %v473_v15, %v1107_v43 }
 0x12e   : > { %v506_v16 = vpop.f32.mrf.mxu1  ;;  %v707_v23 = vpop.permute.xlu1 %706  ;;  %v569_v59 = vsel %vm567_vm11, %v564_v9, %v566_v13  ;;  %v637_v60 = vsel %vm635_vm9, %v632_v10, %v634_v17 }
 0x12f   : > { %v507_v41 = vadd.f32 %v506_v16, %v1107_v43  ;;  %v572_v61 = vmul.f32 %v568_v55, %v474_v35 }
 0x131   : > { %v573_v49 = vmul.f32 %v569_v59, %v507_v41 }
 0x133   : > { %v483_v19 = vpop.f32.mrf.mxu2 }
 0x134   : > { %v516_v21 = vpop.f32.mrf.mxu3  ;;  %v475_v24 = vpop.f32.mrf.mxu0  ;;  %v484_v18 = vadd.f32 %v483_v19, %v1114_v48 }
 0x135   : > { %v705_v20 = vpop.permute.xlu0 %704  ;;  %v668_v28 = vpop.permute.xlu2 %667  ;;  %v476_v30 = vadd.f32 %v475_v24, %v1110_v45  ;;  %v517_v7 = vadd.f32 %v516_v21, %v1114_v48 }
 0x136   : > { %v508_v25 = vpop.f32.mrf.mxu1  ;;  %v739_v33 = vpop.permute.xlu1 %738  ;;  %v671_v10 = vsel %vm669_vm7, %v666_v14, %v668_v28  ;;  %v710_v21 = vsel %vm652_vm5, %v705_v20, %v707_v23 }
 0x137   : > { %v509_v34 = vadd.f32 %v508_v25, %v1110_v45  ;;  %v606_v54 = vmul.f32 %v602_v37, %v476_v30  ;;  %v682_v25 = vmul.f32 %v680_v1, %v484_v18  ;;  %v743_v37 = vsel %vm618_vm3, %v739_v33, %v1217_v6 }
 0x139   : > { %v607_v45 = vmul.f32 %v603_v44, %v509_v34  ;;  %v608_v58 = vadd.f32 %v606_v54, %v572_v61 }
 0x13b   : > { %v485_v26 = vpop.f32.mrf.mxu2  ;;  %v609_v8 = vadd.f32 %v607_v45, %v573_v49 }
 0x13c   : > { %v518_v27 = vpop.f32.mrf.mxu3  ;;  %v478_v29 = vpop.f32.mrf.mxu0  ;;  %v486_v12 = vadd.f32 %v485_v26, %v1112_v47  ;;  %v711_v26 = vsel %vm652_vm5, %v707_v23, %v1215_v3 }
 0x13d   : > { %v737_v31 = vpop.permute.xlu0 %736  ;;  %v479_v36 = vadd.f32 %v478_v29, %v1098_v38  ;;  %v519_v17 = vadd.f32 %v518_v27, %v1112_v47 }
 0x13e   : > { %v511_v32 = vpop.f32.mrf.mxu1  ;;  %v771_v19 = vpop.permute.xlu1 %770  ;;  %v714_v28 = vmul.f32 %v710_v21, %v486_v12 }
 0x13f   : > { %v512_v42 = vadd.f32 %v511_v32, %v1098_v38  ;;  %v640_v62 = vmul.f32 %v636_v56, %v479_v36  ;;  %v679_v38 = vperm.slane %v1062_v22, 4  ;;  %v773_v22 = vpop.permute.xlu2 %772  ;;  %v715_v34 = vmul.f32 %v711_v26, %v519_v17 }
 0x140   : > { %v742_v36 = vsel %vm618_vm3, %v737_v31, %v739_v33  ;;  %v775_v31 = vsel %vm584_vm2, %v771_v19, %v773_v22 }
 0x141   : > { %v641_v63 = vmul.f32 %v637_v60, %v512_v42  ;;  %v642_v13 = vadd.f32 %v640_v62, %v608_v58  ;;  %v681_v52 = vmul.f32 %v679_v38, %v1124_v53 }
 0x143   : > { %v488_v57 = vpop.f32.mrf.mxu2  ;;  %v643_v24 = vadd.f32 %v641_v63, %v609_v8 }
 0x144   : > { %v521_v43 = vpop.f32.mrf.mxu3  ;;  %v480_v0 = vpop.f32.mrf.mxu0  ;;  %v489_v30 = vadd.f32 %v488_v57, %v1102_v40 }
 0x145   : > { %v481_v2 = vadd.f32 %v480_v0, %v1100_v39  ;;  %v769_v15 = vpop.permute.xlu0 %768  ;;  %v522_v47 = vadd.f32 %v521_v43, %v1102_v40 }
 0x146   : > { %v513_v4 = vpop.f32.mrf.mxu1  ;;  %v746_v41 = vmul.f32 %v742_v36, %v489_v30  ;;  %v774_v40 = vsel %vm584_vm2, %v769_v15, %v771_v19  ;;  %v803_v55 = vpop.permute.xlu1 %802 }
 0x147   : > { %v514_v9 = vadd.f32 %v513_v4, %v1100_v39  ;;  %v674_v16 = vmul.f32 %v670_v5, %v481_v2  ;;  %v683_v39 = vmul.f32 %v681_v52, %v517_v7  ;;  %v747_v23 = vmul.f32 %v743_v37, %v522_v47  ;;  %v805_v44 = vpop.permute.xlu2 %804 }
 0x148   : > { %v807_v61 = vsel %vm550_vm8, %v803_v55, %v805_v44 }
 0x149   : > { %v675_v11 = vmul.f32 %v671_v10, %v514_v9  ;;  %v676_v48 = vadd.f32 %v674_v16, %v642_v13 }
 0x14b   : > { %v677_v29 = vadd.f32 %v675_v11, %v643_v24  ;;  %v490_v14 = vpop.f32.mrf.mxu2  ;;  %v684_v32 = vadd.f32 %v682_v25, %v676_v48 }
 0x14c   : > { %v523_v53 = vpop.f32.mrf.mxu3  ;;  %v491_v3 = vadd.f32 %v490_v14, %v1120_v51 }
 0x14d   : > { %v685_v27 = vadd.f32 %v683_v39, %v677_v29  ;;  %v716_v35 = vadd.f32 %v714_v28, %v684_v32  ;;  %v524_v42 = vadd.f32 %v523_v53, %v1120_v51  ;;  %v801_v46 = vpop.permute.xlu0 %800 }
 0x14e   : > { %v778_v57 = vmul.f32 %v774_v40, %v491_v3  ;;  %v806_v59 = vsel %vm550_vm8, %v801_v46, %v803_v55 }
 0x14f   : > { %v717_v20 = vadd.f32 %v715_v34, %v685_v27  ;;  %v748_v54 = vadd.f32 %v746_v41, %v716_v35  ;;  %v779_v60 = vmul.f32 %v775_v31, %v524_v42 }
 0x151   : > { %v749_v56 = vadd.f32 %v747_v23, %v717_v20  ;;  %v780_v62 = vadd.f32 %v778_v57, %v748_v54 }
 0x153   : > { %v493_v45 = vpop.f32.mrf.mxu2  ;;  %v781_v49 = vadd.f32 %v779_v60, %v749_v56 }
 0x154   : > { %v494_v6 = vadd.f32 %v493_v45, %v1118_v50  ;;  %v526_v33 = vpop.f32.mrf.mxu3 }
 0x155   : > { %v527_v51 = vadd.f32 %v526_v33, %v1118_v50 }
 0x156   : > { %v810_v43 = vmul.f32 %v806_v59, %v494_v6 }
 0x157   : > { %v811_v38 = vmul.f32 %v807_v61, %v527_v51 }
 0x158   : > { %v812_v63 = vadd.f32 %v810_v43, %v780_v62 }
 0x159   : > { %v813_v0 = vadd.f32 %v811_v38, %v781_v49 }
 0x15a   : > { %814 = vst [vmem:[%s278_s17] sm:$0xff] %v812_v63 }
 0x15b   : > { %815 = vst [vmem:[%s278_s17 + $0x8] sm:$0xff] %v813_v0  ;;  %v495_v18 = vpop.f32.mrf.mxu2 }
 0x15c   : > { %v528_v1 = vpop.f32.mrf.mxu3 }
 0x15d PF: > { %s17_s24 = sadd.s32 1, %s951_s24  }
 0x15e   : > { %p14_p4 = scmp.ge.s32.totalorder %s17_s24, 4  }
 0x160   :  { %16 = sbr.rel (!%p14_p4) target bundleno = 1 (0x1), region = 78 }

</bundles_post_ra>
